<compile_context>
chip_gen: v7x
topology: tpu7x:2x2x1
jax: 0.10.0
libtpu: 0.0.40
codegen_flags: <defaults>
</compile_context>

<pallas_src>
import jax
import jax.numpy as jnp
from jax.experimental import pallas as pl
from jax.experimental.pallas import tpu as pltpu


def _pos_broadcast_kernel(parts_ref, out_ref):
    # parts_ref: (2F, H*W) batch-invariant table, resident in VMEM.
    # out_ref:   (TB, 2F, H*W) output block for the current batch tile.
    out_ref[...] = jnp.broadcast_to(parts_ref[...][None, :, :], out_ref.shape)


def _pick_batch_tile(batch, bytes_per_batch, vmem_block_budget):
    """Largest batch tile whose (resident input + double-buffered output block)
    fits the budget; keep >=2 grid steps when B >= 2 (v7x megacore); keep TB a
    divisor of B so every block is full (no partial writeback)."""
    max_tb = max(1, int((vmem_block_budget - bytes_per_batch) // (2 * bytes_per_batch)))
    tb = min(batch, max_tb)
    if batch >= 2:
        tb = min(tb, (batch + 1) // 2)
    tb = max(1, tb)
    while batch % tb != 0:
        tb -= 1
    return tb


def position_embedding_learned(x, row_embed_weight, col_embed_weight):
    """x: (B, C, H, W). Returns pos: (B, 2*F, H, W) in the embedding dtype."""
    B, _, H, W = x.shape
    F = row_embed_weight.shape[1]
    # nn.Embedding(50, F) indexed with arange(H)/arange(W) == leading slices.
    assert H <= row_embed_weight.shape[0], "H exceeds row embedding table size"
    assert W <= col_embed_weight.shape[0], "W exceeds col embedding table size"

    # PyTorch returns the embedding-parameter dtype (not x.dtype).
    out_dtype = jnp.result_type(row_embed_weight.dtype, col_embed_weight.dtype)

    x_emb = col_embed_weight[:W].astype(out_dtype)   # (W, F) == col_embed(arange(W))
    y_emb = row_embed_weight[:H].astype(out_dtype)   # (H, F) == row_embed(arange(H))

    # Batch-invariant, lane-dense, contiguous (2F, H*W) table built ONCE
    # (tiny XLA glue, not the hot path):
    #   parts[c,        h*W + w] = x_emb[w, c]   (col embedding, broadcast over H)
    #   parts[F + c,    h*W + w] = y_emb[h, c]   (row embedding, broadcast over W)
    col_half = jnp.broadcast_to(x_emb.T[:, None, :], (F, H, W)).reshape(F, H * W)
    row_half = jnp.broadcast_to(y_emb.T[:, :, None], (F, H, W)).reshape(F, H * W)
    parts = jnp.concatenate([col_half, row_half], axis=0)        # (2F, H*W)

    if B == 1:
        # Output is byte-identical to `parts`; skip the kernel (saves a full
        # HBM read + write).
        return parts.reshape(1, 2 * F, H, W)

    bytes_per_batch = 2 * F * H * W * jnp.dtype(out_dtype).itemsize
    TB = _pick_batch_tile(B, bytes_per_batch, vmem_block_budget=40 << 20)
    num_tiles = B // TB

    needed = bytes_per_batch * (1 + 2 * TB)          # resident input + 2x output block
    vmem_limit = int(min(64 << 20, max(needed + (4 << 20), 16 << 20)))

    out_flat = pl.pallas_call(
        _pos_broadcast_kernel,
        out_shape=jax.ShapeDtypeStruct((B, 2 * F, H * W), out_dtype),
        grid=(num_tiles,),
        in_specs=[
            # Whole table resident in VMEM: one HBM read total, no double buffer.
            pl.BlockSpec(memory_space=pltpu.MemorySpace.VMEM),
        ],
        out_specs=pl.BlockSpec((TB, 2 * F, H * W), lambda b: (b, 0, 0)),
        compiler_params=pltpu.CompilerParams(
            dimension_semantics=("parallel",),
            vmem_limit_bytes=vmem_limit,
        ),
    )(parts)

    # Free minor-dim reshape back to NCHW.
    return out_flat.reshape(B, 2 * F, H, W)


if __name__ == "__main__":
    key = jax.random.PRNGKey(0)
    k_row, k_col, k_x = jax.random.split(key, 3)

    num_pos_feats = 32          # F  (PyTorch default is 256; small for the demo)
    B, C, H, W = 2, 4, 16, 16

    # nn.init.uniform_ -> U[0, 1), tables of shape (50, num_pos_feats)
    row_embed_weight = jax.random.uniform(k_row, (50, num_pos_feats), jnp.float32)
    col_embed_weight = jax.random.uniform(k_col, (50, num_pos_feats), jnp.float32)

    x = jax.random.normal(k_x, (B, C, H, W), jnp.float32)

    pos = position_embedding_learned(x, row_embed_weight, col_embed_weight)
    pos = jax.block_until_ready(pos)

    # Pure-JAX reference of the PyTorch forward for validation.
    x_emb = col_embed_weight[:W]                      # (W, F)
    y_emb = row_embed_weight[:H]                      # (H, F)
    ref = jnp.concatenate(
        [jnp.broadcast_to(x_emb[None, :, :], (H, W, num_pos_feats)),
         jnp.broadcast_to(y_emb[:, None, :], (H, W, num_pos_feats))],
        axis=-1)                                      # (H, W, 2F)
    ref = jnp.transpose(ref, (2, 0, 1))[None]         # (1, 2F, H, W)
    ref = jnp.broadcast_to(ref, (B, 2 * num_pos_feats, H, W))

    assert pos.shape == (B, 2 * num_pos_feats, H, W)
    assert pos.dtype == row_embed_weight.dtype
    assert jnp.allclose(pos, ref), "mismatch vs reference"

    # Also exercise the B == 1 short-circuit path.
    pos1 = jax.block_until_ready(
        position_embedding_learned(x[:1], row_embed_weight, col_embed_weight))
    assert jnp.allclose(pos1, ref[:1]), "mismatch vs reference (B=1 path)"

    print("KERNEL_OK")
</pallas_src>

<mosaic_0001>
module attributes {stable_mosaic.version = 11 : i64} {
  func.func @_pos_broadcast_kernel(%arg0: i32, %arg1: memref<64x256xf32, #tpu.memory_space<vmem>>, %arg2: memref<1x64x256xf32, #tpu.memory_space<vmem>>) attributes {dimension_semantics = [#tpu.dimension_semantics<parallel>], iteration_bounds = array<i64: 2>, scalar_prefetch = 0 : i64, scratch_operands = 0 : i64, tpu.core_type = #tpu.core_type<tc>, window_params = [{pipeline_mode = #tpu.pipeline_mode<synchronous>, transform_indices = @transform_0, window_bounds = array<i64: 64, 256>}, {transform_indices = @transform_1, window_bounds = array<i64: 1, 64, 256>}]} {
    %c0 = arith.constant 0 : index
    %c0_0 = arith.constant 0 : index
    %0 = vector.load %arg1[%c0, %c0_0] : memref<64x256xf32, #tpu.memory_space<vmem>>, vector<64x256xf32>
    %1 = vector.shape_cast %0 : vector<64x256xf32> to vector<1x64x256xf32>
    %c0_1 = arith.constant 0 : index
    %c0_2 = arith.constant 0 : index
    %c0_3 = arith.constant 0 : index
    %2 = vector.load %arg2[%c0_1, %c0_2, %c0_3] : memref<1x64x256xf32, #tpu.memory_space<vmem>>, vector<1x64x256xf32>
    tpu.vector_store %arg2[%c0_1, %c0_2, %c0_3], %1 {strides = array<i32>} : memref<1x64x256xf32, #tpu.memory_space<vmem>>, vector<1x64x256xf32>,
    return
  }
  func.func @transform_0(%arg0: i32) -> (i32, i32) {
    %c0_i32 = arith.constant 0 : i32
    %c0_i32_0 = arith.constant 0 : i32
    %c0_i32_1 = arith.constant 0 : i32
    return %c0_i32, %c0_i32_0 : i32, i32
  }
  func.func @transform_1(%arg0: i32) -> (i32, i32, i32) {
    %c0_i32 = arith.constant 0 : i32
    %c0_i32_0 = arith.constant 0 : i32
    %c0_i32_1 = arith.constant 0 : i32
    return %arg0, %c0_i32, %c0_i32_0 : i32, i32, i32
  }
}

</mosaic_0001>

<bundles_post_ra>
// kernel: tpu_custom_call.1
= control target key start
LH: loop header
LB: loop body
LE: loop exit
PB: predicated region body
PF: predicated region fallthrough
CT: control target
= control target key end

     0   :  { %6 = vsyncpa [#allocation3], 0  ;;  %s552_s0 = inlined_call_operand.hbm [shape: f32[64,256], index: 0, kind: input, shape index: {}]   ;;  %s553_s1 = inlined_call_operand.hbm [shape: f32[2,64,256], index: 1, kind: output, shape index: {}]  }
   0x1   :  { %7 = vsyncpa [#allocation4], 0 }
   0x2   :  { %9 = vsyncpa [#allocation4 + $0x1], 0  ;;  %s396_s6 = smov 0   ;;  %s398_s7 = smov 0  }
   0x3   :  { %s400_s8 = smov 0   ;;  %s402_s9 = smov 0  }
   0x4 LB: > { %s417_s10 = sadd.s32 4294967295, %s378_s9   ;;  %s218_s11 = sadd.s32 4294967294, %s378_s9   ;;  %s378_s9 = sphi %s402_s9, %s569_s9   ;;  %s374_s8 = sphi %s400_s8, %s568_s8   ;;  %s370_s7 = sphi %s398_s7, %s567_s7   ;;  %s366_s6 = sphi %s396_s6, %s566_s6  }
   0x5   : > { %s421_s12 = sadd.s32 1, %s378_s9   ;;  %s43_s13 = sadd.s32 1, %s374_s8 }
   0x6   : > { %s40_s14 = ssub.s32 %s378_s9, %s421_s12  ;;  %p53_p0 = scmp.ne.s32.totalorder %s374_s8, %s370_s7 }
   0x7   : > { %p41_p1 = scmp.eq.s32.totalorder %s40_s14, 0  ;;  %p54_p2 = scmp.eq.s32.totalorder %s417_s10, 1 }
   0x8   : > { %p59_p3 = scmp.ne.s32.totalorder %s370_s7, %s366_s6  ;;  %p60_p4 = scmp.eq.s32.totalorder %s218_s11, 1 }
   0x9   : > { %s432_s15 = scalar_select %p41_p1, %s374_s8, %s43_s13  }
   0xa   : > { %p434_p5 = por %p54_p2, %p53_p0  ;;  %p438_p6 = por %p60_p4, %p59_p3 }
   0xb   : > { %p219_p7 = scmp.ge.s32.totalorder %s378_s9, 1  ;;  %p67_p8 = scmp.lt.s32.totalorder %s378_s9, 3 }
   0xc   : > { %s557_s16 = scalar_select %p434_p5, 1, 0 }
   0xd   : > { %s558_s17 = scalar_select %p438_p6, 1, 0 }
   0xe   : > { %p554_p9 = scmp.eq.s32.totalorder %s417_s10, 0  ;;  %p445_p10 = pnand %p219_p7, %p67_p8 }
   0xf   : > { %s380_s19 = smov [#allocation2]   ;;  %s284_s24 = scalar_lea.hbm %s552_s0, 2048 }
  0x10   : > { %s559_s18 = scalar_select %p445_p10, 1, 0 }
  0x11   : > { %s79_s20 = sshll.u32 %s380_s19, 4  ;;  %p236_p11 = pneg %p445_p10  ;;  %s80_s20 = int_to_ptr.vmem [resolvable:$true] %s79_s20 }
  0x12   : > { %p285_p13 = scmp.ne.s32.totalorder %s552_s0, %s284_s24  ;;  %p291_p3 = scmp.lt.u32.totalorder %s284_s24, %s552_s0 }
  0x13   : > { %p453_p12 = pnand %p554_p9, %p236_p11 }
  0x15   : > { %p286_p0 = pneg %p453_p12 }
  0x17   : > { %p287_p1 = pnand %p286_p0, %p285_p13 }
  0x19   : > { %p288_p2 = pneg %p287_p1 }
  0x1b   : > { %p293_p4 = pnand %p291_p3, %p288_p2 }
  0x1d   : > { %296 = shalt.err (!%p293_p4)
}
  0x1e   : > { %s297_s29 = scalar_lea.vmem %s80_s20, 2048  ;;  %p305_p9 = scmp.lt.s32.totalorder %s80_s20, %s80_s20 }
  0x1f   : > { %p298_p7 = scmp.ne.s32.totalorder %s80_s20, %s297_s29  ;;  %p306_p6 = scmp.lt.s32.totalorder %s297_s29, %s297_s29 }
  0x21   : > { %p300_p8 = pnand %p298_p7, %p286_p0  ;;  %p307_p5 = por %p306_p6, %p305_p9 }
  0x23   : > { %p301_p11 = pneg %p300_p8 }
  0x25   : > { %p308_p10 = pnand %p307_p5, %p301_p11 }
  0x27   : > { %311 = shalt.err (!%p308_p10)
}
  0x28   : > { %s381_s30 = smov 256   ;;  %s382_s2 = smov 16  }
  0x29   : > { %239 = dma.hbm_to_vmem [thread:$0]  (!%p453_p12), %s552_s0, 2048, %s80_s20, [#allocation3], %s381_s30, %s381_s30, %s382_s2  }
  0x2a   : > { %p561_p13 = scmp.ne.s32.totalorder %s559_s18, 0 }
  0x2b   : > { %p562_p1 = scmp.eq.s32.totalorder (!%p561_p13), %s417_s10, 0 }
  0x2c   : > { %95 = sbr.rel (%p561_p13) target bundleno = 79 (0x4f), region = 24 }
  0x33   : > { %357 = dma.done.wait (%p562_p1), [#allocation3], 2048   ;;  %p563_p0 = pmov %p562_p1 }
  0x34   : > { %s107_s5 = sand.u32 1, %s370_s7   ;;  %v110_v0 = vld [vmem:[#allocation2] sm:$0xff]  ;;  %v111_v1 = vld [vmem:[#allocation2 + $0x8] sm:$0xff]  ;;  %v112_v2 = vld [vmem:[#allocation2 + $0x10] sm:$0xff]  ;;  %s229_s13 = sshll.u32 %s417_s10, 11 }
  0x35   : > { %359 = vsyncadd (%p563_p0), [#allocation3], 4294965248  ;;  %s223_s11 = sshll.u32 %s107_s5, 7  ;;  %v113_v3 = vld [vmem:[#allocation2 + $0x18] sm:$0xff]  ;;  %v114_v4 = vld [vmem:[#allocation2 + $0x20] sm:$0xff]  ;;  %s498_s20 = scalar_lea.hbm %s553_s1, %s229_s13 }
  0x36   : > { %s483_s14 = scalar_lea.vmem [#allocation5], %s223_s11  ;;  %v115_v5 = vld [vmem:[#allocation2 + $0x28] sm:$0xff]  ;;  %v116_v6 = vld [vmem:[#allocation2 + $0x30] sm:$0xff]  ;;  %v117_v7 = vld [vmem:[#allocation2 + $0x38] sm:$0xff]  ;;  %s511_s21 = scalar_lea.sflag [#allocation4], %s107_s5 }
  0x37   : > { %126 = vst [vmem:[%s483_s14] sm:$0xff] %v110_v0  ;;  %127 = vst [vmem:[%s483_s14 + $0x8] sm:$0xff] %v111_v1  ;;  %s156_s10 = sshll.u32 %s483_s14, 4  ;;  %v118_v8 = vld [vmem:[#allocation2 + $0x40] sm:$0xff]  ;;  %v119_v9 = vld [vmem:[#allocation2 + $0x48] sm:$0xff]  ;;  %p564_p6 = scmp.ne.s32.totalorder %s557_s16, 0  ;;  %s503_s10 = int_to_ptr.vmem [resolvable:$true] %s156_s10 }
  0x38   : > { %128 = vst [vmem:[%s483_s14 + $0x10] sm:$0xff] %v112_v2  ;;  %129 = vst [vmem:[%s483_s14 + $0x18] sm:$0xff] %v113_v3  ;;  %v120_v10 = vld [vmem:[#allocation2 + $0x50] sm:$0xff]  ;;  %v121_v11 = vld [vmem:[#allocation2 + $0x58] sm:$0xff]  ;;  %s312_s22 = scalar_lea.vmem %s503_s10, 2048  ;;  %s383_s23 = smov [#allocation5]  }
  0x39   : > { %130 = vst [vmem:[%s483_s14 + $0x20] sm:$0xff] %v114_v4  ;;  %131 = vst [vmem:[%s483_s14 + $0x28] sm:$0xff] %v115_v5  ;;  %v122_v12 = vld [vmem:[#allocation2 + $0x60] sm:$0xff]  ;;  %v123_v13 = vld [vmem:[#allocation2 + $0x68] sm:$0xff]  ;;  %p313_p5 = scmp.ne.s32.totalorder %s503_s10, %s312_s22  ;;  %s316_s24 = sshll.u32 %s383_s23, 4  ;;  %s317_s24 = int_to_ptr.vmem [resolvable:$false] %s316_s24 }
  0x3a   : > { %132 = vst [vmem:[%s483_s14 + $0x30] sm:$0xff] %v116_v6  ;;  %133 = vst [vmem:[%s483_s14 + $0x38] sm:$0xff] %v117_v7  ;;  %v124_v14 = vld [vmem:[#allocation2 + $0x70] sm:$0xff]  ;;  %v125_v15 = vld [vmem:[#allocation2 + $0x78] sm:$0xff]  ;;  %s318_s25 = scalar_lea.vmem %s317_s24, 4096  ;;  %p319_p12 = scmp.lt.s32.totalorder %s503_s10, %s317_s24 }
  0x3b   : > { %134 = vst [vmem:[%s483_s14 + $0x40] sm:$0xff] %v118_v8  ;;  %135 = vst [vmem:[%s483_s14 + $0x48] sm:$0xff] %v119_v9  ;;  %p314_p9 = pnand %p313_p5, %p564_p6  ;;  %p320_p2 = scmp.lt.s32.totalorder %s318_s25, %s312_s22 }
  0x3c   : > { %136 = vst [vmem:[%s483_s14 + $0x50] sm:$0xff] %v120_v10  ;;  %137 = vst [vmem:[%s483_s14 + $0x58] sm:$0xff] %v121_v11 }
  0x3d   : > { %138 = vst [vmem:[%s483_s14 + $0x60] sm:$0xff] %v122_v12  ;;  %139 = vst [vmem:[%s483_s14 + $0x68] sm:$0xff] %v123_v13  ;;  %p315_p10 = pneg %p314_p9  ;;  %p321_p3 = por %p320_p2, %p319_p12 }
  0x3e   : > { %140 = vst [vmem:[%s483_s14 + $0x70] sm:$0xff] %v124_v14  ;;  %141 = vst [vmem:[%s483_s14 + $0x78] sm:$0xff] %v125_v15 }
  0x3f   : > { %p322_p4 = pnand %p321_p3, %p315_p10 }
  0x41   : > { %325 = shalt.err (!%p322_p4)
}
  0x42   : > { %s326_s26 = scalar_lea.hbm %s498_s20, 2048  ;;  %s330_s29 = scalar_lea.hbm %s553_s1, 4096 }
  0x43   : > { %p327_p7 = scmp.ne.s32.totalorder %s498_s20, %s326_s26  ;;  %p331_p13 = scmp.lt.u32.totalorder %s498_s20, %s553_s1 }
  0x44   : > { %p332_p1 = scmp.lt.u32.totalorder %s330_s29, %s326_s26  ;;  %p334_p5 = scmp.lt.u32.totalorder %s326_s26, %s498_s20 }
  0x45   : > { %p328_p8 = pnand %p327_p7, %p564_p6 }
  0x46   : > { %p333_p0 = por %p332_p1, %p331_p13 }
  0x47   : > { %p329_p11 = pneg %p328_p8 }
  0x48   : > { %p335_p9 = por %p334_p5, %p333_p0 }
  0x4a   : > { %p336_p10 = pnand %p335_p9, %p329_p11 }
  0x4c   : > { %339 = shalt.err (!%p336_p10)
}
  0x4d   : > { %s384_s3 = smov 256   ;;  %s385_s4 = smov 16  }
  0x4e   : > { %234 = dma.vmem_to_hbm [thread:$0]  (%p564_p6), %s503_s10, 2048, %s498_s20, %s511_s21, %s384_s3, %s384_s3, %s385_s4  }
  0x4f PF: > { %p246_p12 = scmp.ge.s32.totalorder %s378_s9, 2  ;;  %s171_s5 = sand.u32 1, %s366_s6  }
  0x50   : > { %p565_p2 = scmp.ne.s32.totalorder %s558_s17, 0  ;;  %s172_s11 = scalar_lea.sflag [#allocation4], %s171_s5 }
  0x52   : > { %p241_p3 = pnand %p246_p12, %p565_p2 }
  0x54   : > { %361 = dma.done.wait (!%p241_p3), %s172_s11, 2048  }
  0x55   : > { %363 = vsyncadd (!%p241_p3), %s172_s11, 4294965248  ;;  %p12_p4 = scmp.ge.s32.totalorder %s421_s12, 4   ;;  %s566_s6 = smov %s370_s7 }
  0x56   : > { %s567_s7 = smov %s374_s8  ;;  %s568_s8 = smov %s432_s15 }
  0x57   : > { %s569_s9 = smov %s421_s12  ;;  %14 = sbr.rel (!%p12_p4) target bundleno = 4 (0x4), region = 61 }
  0x5e   :  { %177 = vsyncpa [#allocation3], 1 }
  0x5f   :  { %179 = vsyncpa [#allocation3 + $0x1], 1 }
  0x60   :  { %180 = vsyncpa [#allocation4], 1 }
  0x61   :  { %182 = vsyncpa [#allocation4 + $0x1], 1 }

</bundles_post_ra>
